<compile_context>
chip_gen: v7x
topology: tpu7x:2x2x1
jax: 0.10.0
libtpu: 0.0.40
codegen_flags: <defaults>
</compile_context>

<pallas_src>
import jax
import jax.numpy as jnp
from jax import lax
from jax.experimental import pallas as pl
from jax.experimental.pallas import tpu as pltpu


def _round_up(x, m):
    return (x + m - 1) // m * m


def _sigmoid(x):
    return 1.0 / (1.0 + jnp.exp(-x))


# ---------------------------------------------------------------------------
# 1) Embedding: gather via scalar-prefetched ids (SMEM) + VMEM-resident table
# ---------------------------------------------------------------------------
def embed_gather_kernel(ids_ref, table_ref, o_ref):
    # ids_ref:   (n_tok_padded,) int32 in SMEM (scalar prefetch)
    # table_ref: (n_vocab, 1, n_emb) f32, fully resident in VMEM
    # o_ref:     (tok_blk, 1, n_emb) f32
    tok_blk = o_ref.shape[0]
    base = pl.program_id(0) * tok_blk
    for t in range(tok_blk):                    # small static unroll
        o_ref[t] = table_ref[ids_ref[base + t]]


def embedding_lookup(words, table, padding_idx, *, tok_blk=8):
    """words: (S, B) int32, table: (n_vocab, n_emb) f32 -> (S, B, n_emb)."""
    S, B = words.shape
    n_vocab, n_emb = table.shape
    n_tok = S * B
    ids = words.reshape(n_tok).astype(jnp.int32)
    pad = (-n_tok) % tok_blk
    if pad:
        ids = jnp.concatenate([ids, jnp.full((pad,), padding_idx, jnp.int32)])
    n_pad_tok = n_tok + pad
    table3 = table.reshape(n_vocab, 1, n_emb)

    # TODO(synk): for large vocabularies (table >> VMEM, e.g. on v7x's 64 MiB),
    # switch to an HBM gather (memory_space=pl.ANY + per-row make_async_copy).
    out = pl.pallas_call(
        embed_gather_kernel,
        out_shape=jax.ShapeDtypeStruct((n_pad_tok, 1, n_emb), table.dtype),
        grid_spec=pltpu.PrefetchScalarGridSpec(
            num_scalar_prefetch=1,
            grid=(n_pad_tok // tok_blk,),
            in_specs=[pl.BlockSpec((n_vocab, 1, n_emb), lambda i, ids: (0, 0, 0))],
            out_specs=pl.BlockSpec((tok_blk, 1, n_emb), lambda i, ids: (i, 0, 0)),
        ),
        compiler_params=pltpu.CompilerParams(
            dimension_semantics=("parallel",),
            vmem_limit_bytes=32 * 1024 * 1024,
        ),
        cost_estimate=pl.CostEstimate(
            flops=0,
            transcendentals=0,
            bytes_accessed=(n_vocab * n_emb + 2 * n_pad_tok * n_emb) * 4,
        ),
    )(ids, table3)
    return out[:n_tok].reshape(S, B, n_emb)


# ---------------------------------------------------------------------------
# 2) Time-batched input projection: Y = X @ W + b
# ---------------------------------------------------------------------------
def matmul_bias_kernel(x_ref, w_ref, b_ref, o_ref):
    o_ref[...] = (
        jnp.dot(x_ref[...], w_ref[...], preferred_element_type=jnp.float32)
        + b_ref[...]
    ).astype(o_ref.dtype)


def linear_bias(x, w, bias, *, tm=256):
    # x: (M, K), w: (K, N), bias: (1, N) -> (M, N) f32
    M, K = x.shape
    _, N = w.shape
    tm = min(tm, _round_up(M, 8))
    Mp = _round_up(M, tm)
    if Mp != M:
        x = jnp.concatenate([x, jnp.zeros((Mp - M, K), x.dtype)], axis=0)
    out = pl.pallas_call(
        matmul_bias_kernel,
        out_shape=jax.ShapeDtypeStruct((Mp, N), jnp.float32),
        grid=(Mp // tm,),
        in_specs=[
            pl.BlockSpec((tm, K), lambda i: (i, 0)),
            pl.BlockSpec((K, N), lambda i: (0, 0)),
            pl.BlockSpec((1, N), lambda i: (0, 0)),
        ],
        out_specs=pl.BlockSpec((tm, N), lambda i: (i, 0)),
        compiler_params=pltpu.CompilerParams(
            dimension_semantics=("parallel",),
            vmem_limit_bytes=32 * 1024 * 1024,
        ),
        cost_estimate=pl.CostEstimate(
            flops=2 * Mp * K * N,
            transcendentals=0,
            bytes_accessed=(Mp * K + K * N + N + Mp * N) * 4,
        ),
    )(x, w, bias)
    return out[:M]


# ---------------------------------------------------------------------------
# 3) Sequential LSTM recurrence (grid over time, h/c carried in VMEM scratch)
# ---------------------------------------------------------------------------
def lstm_step_kernel(xp_ref, whh_ref, out_ref, hn_ref, cn_ref, h_sc, c_sc):
    # xp_ref : (1, B, 4H)  precomputed x_t @ W_ih^T + (b_ih + b_hh)
    # whh_ref: (H, 4H)     W_hh^T (resident)
    # out_ref: (1, B, H)   enc_outs block for time t
    # hn_ref : (B, H)      final hidden state (written at last step)
    # cn_ref : (B, H)      final cell state  (written at last step)
    t = pl.program_id(0)
    H = h_sc.shape[-1]

    @pl.when(t == 0)
    def _():
        h_sc[...] = jnp.zeros_like(h_sc)
        c_sc[...] = jnp.zeros_like(c_sc)

    gates = xp_ref[0] + jnp.dot(
        h_sc[...], whh_ref[...], preferred_element_type=jnp.float32
    )
    # PyTorch gate order: i, f, g, o
    i_g = _sigmoid(gates[:, 0 * H:1 * H])
    f_g = _sigmoid(gates[:, 1 * H:2 * H])
    g_g = jnp.tanh(gates[:, 2 * H:3 * H])
    o_g = _sigmoid(gates[:, 3 * H:4 * H])

    c_new = f_g * c_sc[...] + i_g * g_g
    h_new = o_g * jnp.tanh(c_new)
    h_sc[...] = h_new
    c_sc[...] = c_new
    out_ref[0] = h_new.astype(out_ref.dtype)

    @pl.when(t == pl.num_programs(0) - 1)
    def _():
        hn_ref[...] = h_new.astype(hn_ref.dtype)
        cn_ref[...] = c_new.astype(cn_ref.dtype)


def lstm_recurrence(xp, w_hh_t):
    # xp: (S, B, 4H) f32 ; w_hh_t: (H, 4H) f32
    S, B, H4 = xp.shape
    H = H4 // 4
    out_shape = (
        jax.ShapeDtypeStruct((S, B, H), jnp.float32),
        jax.ShapeDtypeStruct((B, H), jnp.float32),
        jax.ShapeDtypeStruct((B, H), jnp.float32),
    )
    return pl.pallas_call(
        lstm_step_kernel,
        out_shape=out_shape,
        grid=(S,),
        in_specs=[
            pl.BlockSpec((1, B, H4), lambda t: (t, 0, 0)),
            pl.BlockSpec((H, H4), lambda t: (0, 0)),
        ],
        out_specs=(
            pl.BlockSpec((1, B, H), lambda t: (t, 0, 0)),
            pl.BlockSpec((B, H), lambda t: (0, 0)),
            pl.BlockSpec((B, H), lambda t: (0, 0)),
        ),
        scratch_shapes=[
            pltpu.VMEM((B, H), jnp.float32),
            pltpu.VMEM((B, H), jnp.float32),
        ],
        compiler_params=pltpu.CompilerParams(
            dimension_semantics=("arbitrary",),
            vmem_limit_bytes=32 * 1024 * 1024,
        ),
        cost_estimate=pl.CostEstimate(
            flops=2 * S * B * H * H4 + 10 * S * B * H,
            transcendentals=4 * S * B * H,
            bytes_accessed=(S * B * H4 + H * H4 + S * B * H + 2 * B * H) * 4,
        ),
    )(xp, w_hh_t)


# ---------------------------------------------------------------------------
# LSTMEncoder forward (wrapper orchestration)
# ---------------------------------------------------------------------------
def lstm_layer_forward(x, w_ih, w_hh, b_ih, b_hh):
    # x: (S, B, E); PyTorch weight layout: w_ih (4H, E), w_hh (4H, H)
    S, B, E = x.shape
    H4 = w_ih.shape[0]
    bias = (b_ih + b_hh).reshape(1, H4)
    xp = linear_bias(x.reshape(S * B, E), w_ih.T, bias).reshape(S, B, H4)
    return lstm_recurrence(xp, w_hh.T)


def lstm_encoder_forward(src_seqs, emb_table, padding_idx, lstm_params,
                         n_unit, n_layer, bidirectional):
    """Pallas forward of LSTMEncoder. src_seqs: (S, B) int32."""
    S, B = src_seqs.shape
    x = embedding_lookup(src_seqs, emb_table, padding_idx)     # (S, B, n_emb)
    # nn.Dropout is identity in eval/inference mode.
    # TODO(synk): training-mode dropout (stochastic mask via pltpu.prng_*) not implemented.
    dirs = 2 if bidirectional else 1
    hs_list, cs_list = [], []
    for layer in range(n_layer):
        outs = []
        for d in range(dirs):
            w_ih, w_hh, b_ih, b_hh = lstm_params[layer][d]
            xd = x if d == 0 else jnp.flip(x, axis=0)
            out_d, h_n, c_n = lstm_layer_forward(xd, w_ih, w_hh, b_ih, b_hh)
            if d == 1:
                out_d = jnp.flip(out_d, axis=0)
            outs.append(out_d)
            hs_list.append(h_n)
            cs_list.append(c_n)
        x = outs[0] if dirs == 1 else jnp.concatenate(outs, axis=-1)
    enc_outs = x
    hs = jnp.stack(hs_list, axis=0)      # (n_layer*dirs, B, n_unit)
    cs = jnp.stack(cs_list, axis=0)
    if bidirectional:
        def combine_bidir(t):
            return (t.reshape(n_layer, 2, B, n_unit)
                     .transpose(0, 2, 1, 3)
                     .reshape(n_layer, B, 2 * n_unit))
        hs = combine_bidir(hs)
        cs = combine_bidir(cs)
    return enc_outs, (hs, cs)


# ---------------------------------------------------------------------------
# Parameter init (matches the PyTorch uniform_(-0.1, 0.1) init)
# ---------------------------------------------------------------------------
def init_embedding_table(key, n_vocab, n_emb, padding_idx):
    w = jax.random.uniform(key, (n_vocab, n_emb), jnp.float32, -0.1, 0.1)
    return w.at[padding_idx].set(0.0)


def init_lstm_params(key, input_size, hidden_size, num_layers, bidirectional):
    dirs = 2 if bidirectional else 1
    params = []
    for layer in range(num_layers):
        per_dir = []
        for _ in range(dirs):
            in_size = input_size if layer == 0 else hidden_size * dirs
            key, k1, k2, k3, k4 = jax.random.split(key, 5)
            per_dir.append((
                jax.random.uniform(k1, (4 * hidden_size, in_size), jnp.float32, -0.1, 0.1),
                jax.random.uniform(k2, (4 * hidden_size, hidden_size), jnp.float32, -0.1, 0.1),
                jax.random.uniform(k3, (4 * hidden_size,), jnp.float32, -0.1, 0.1),
                jax.random.uniform(k4, (4 * hidden_size,), jnp.float32, -0.1, 0.1),
            ))
        params.append(per_dir)
    return params


# ---------------------------------------------------------------------------
# Pure-JAX reference (same math, lax.scan), for correctness check
# ---------------------------------------------------------------------------
def _ref_lstm_layer(x, w_ih, w_hh, b_ih, b_hh):
    S, B, _ = x.shape
    H = w_hh.shape[1]
    wi, wh, bias = w_ih.T, w_hh.T, b_ih + b_hh

    def step(carry, x_t):
        h, c = carry
        gates = (jnp.dot(x_t, wi, precision=lax.Precision.HIGHEST)
                 + jnp.dot(h, wh, precision=lax.Precision.HIGHEST) + bias)
        i = _sigmoid(gates[:, :H])
        f = _sigmoid(gates[:, H:2 * H])
        g = jnp.tanh(gates[:, 2 * H:3 * H])
        o = _sigmoid(gates[:, 3 * H:])
        c = f * c + i * g
        h = o * jnp.tanh(c)
        return (h, c), h

    init = (jnp.zeros((B, H), jnp.float32), jnp.zeros((B, H), jnp.float32))
    (h_n, c_n), out = lax.scan(step, init, x)
    return out, h_n, c_n


def ref_encoder(src_seqs, table, lstm_params, n_unit, n_layer, bidirectional):
    S, B = src_seqs.shape
    x = jnp.take(table, src_seqs.reshape(-1), axis=0).reshape(S, B, -1)
    dirs = 2 if bidirectional else 1
    hs, cs = [], []
    for layer in range(n_layer):
        outs = []
        for d in range(dirs):
            w_ih, w_hh, b_ih, b_hh = lstm_params[layer][d]
            xd = x if d == 0 else jnp.flip(x, axis=0)
            o, h_n, c_n = _ref_lstm_layer(xd, w_ih, w_hh, b_ih, b_hh)
            if d == 1:
                o = jnp.flip(o, axis=0)
            outs.append(o); hs.append(h_n); cs.append(c_n)
        x = outs[0] if dirs == 1 else jnp.concatenate(outs, axis=-1)
    hs, cs = jnp.stack(hs), jnp.stack(cs)
    if bidirectional:
        hs = hs.reshape(n_layer, 2, B, n_unit).transpose(0, 2, 1, 3).reshape(n_layer, B, 2 * n_unit)
        cs = cs.reshape(n_layer, 2, B, n_unit).transpose(0, 2, 1, 3).reshape(n_layer, B, 2 * n_unit)
    return x, (hs, cs)


if __name__ == "__main__":
    jax.config.update("jax_default_matmul_precision", "highest")

    key = jax.random.PRNGKey(0)
    k_emb, k_ids, k_uni, k_bi = jax.random.split(key, 4)

    # Small shapes; feature dims are multiples of 128 (lane-dense stores).
    n_vocab, n_emb, padding_idx = 64, 128, 0
    n_unit, n_layer = 128, 2
    S, B = 8, 2

    table = init_embedding_table(k_emb, n_vocab, n_emb, padding_idx)
    src_seqs = jax.random.randint(k_ids, (S, B), 0, n_vocab, dtype=jnp.int32)
    src_seqs = src_seqs.at[0, 0].set(padding_idx)   # ensure a padding token appears

    # Embedding gather check (exact)
    emb = jax.block_until_ready(embedding_lookup(src_seqs, table, padding_idx))
    ref_emb = jnp.take(table, src_seqs.reshape(-1), axis=0).reshape(S, B, n_emb)
    assert jnp.array_equal(emb, ref_emb), "embedding gather mismatch"
    assert jnp.all(emb[0, 0] == 0.0), "padding_idx row must be zero"

    # Full encoder check, unidirectional (module default) and bidirectional
    for bidirectional, k_lstm in ((False, k_uni), (True, k_bi)):
        params = init_lstm_params(k_lstm, n_emb, n_unit, n_layer, bidirectional)
        enc_outs, (hs, cs) = lstm_encoder_forward(
            src_seqs, table, padding_idx, params, n_unit, n_layer, bidirectional)
        enc_outs = jax.block_until_ready(enc_outs)

        out_units = n_unit * (2 if bidirectional else 1)
        assert enc_outs.shape == (S, B, out_units)
        assert hs.shape == (n_layer, B, out_units)
        assert cs.shape == (n_layer, B, out_units)

        ref_out, (ref_hs, ref_cs) = ref_encoder(
            src_seqs, table, params, n_unit, n_layer, bidirectional)
        tol = dict(atol=2e-3, rtol=2e-3)   # margin for MXU f32 pass-count differences
        assert jnp.allclose(enc_outs, ref_out, **tol), "enc_outs mismatch"
        assert jnp.allclose(hs, ref_hs, **tol), "h_n mismatch"
        assert jnp.allclose(cs, ref_cs, **tol), "c_n mismatch"

    print("KERNEL_OK")
</pallas_src>

<mosaic_0001>
module attributes {stable_mosaic.version = 11 : i64} {
  func.func @embed_gather_kernel(%arg0: i32, %arg1: memref<16xi32, #tpu.memory_space<smem>>, %arg2: memref<64x1x128xf32, #tpu.memory_space<vmem>>, %arg3: memref<8x1x128xf32, #tpu.memory_space<vmem>>) attributes {dimension_semantics = [#tpu.dimension_semantics<parallel>], iteration_bounds = array<i64: 2>, scalar_prefetch = 1 : i64, scratch_operands = 0 : i64, tpu.core_type = #tpu.core_type<tc>, window_params = [{pipeline_mode = #tpu.pipeline_mode<synchronous>, transform_indices = @transform_0, window_bounds = array<i64: 64, 1, 128>}, {transform_indices = @transform_1, window_bounds = array<i64: 8, 1, 128>}]} {
    %c8_i32 = arith.constant 8 : i32
    %0 = arith.muli %arg0, %c8_i32 : i32
    %c0_i32 = arith.constant 0 : i32
    %1 = arith.addi %0, %c0_i32 : i32
    %2 = arith.index_cast %1 : i32 to index
    %3 = memref.load %arg1[%2] : memref<16xi32, #tpu.memory_space<smem>>
    %4 = arith.index_cast %3 : i32 to index
    %c0 = arith.constant 0 : index
    %c0_0 = arith.constant 0 : index
    %5 = vector.load %arg2[%4, %c0, %c0_0] : memref<64x1x128xf32, #tpu.memory_space<vmem>>, vector<1x1x128xf32>
    %6 = vector.shape_cast %5 : vector<1x1x128xf32> to vector<1x128xf32>
    %c0_1 = arith.constant 0 : index
    %c0_2 = arith.constant 0 : index
    %c0_3 = arith.constant 0 : index
    %7 = vector.load %arg3[%c0_1, %c0_2, %c0_3] : memref<8x1x128xf32, #tpu.memory_space<vmem>>, vector<1x1x128xf32>
    %8 = vector.shape_cast %7 : vector<1x1x128xf32> to vector<1x128xf32>
    %9 = vector.shape_cast %6 : vector<1x128xf32> to vector<1x1x128xf32>
    tpu.vector_store %arg3[%c0_1, %c0_2, %c0_3], %9 {strides = array<i32>} : memref<8x1x128xf32, #tpu.memory_space<vmem>>, vector<1x1x128xf32>,
    %c1_i32 = arith.constant 1 : i32
    %10 = arith.addi %0, %c1_i32 : i32
    %11 = arith.index_cast %10 : i32 to index
    %12 = memref.load %arg1[%11] : memref<16xi32, #tpu.memory_space<smem>>
    %13 = arith.index_cast %12 : i32 to index
    %c0_4 = arith.constant 0 : index
    %c0_5 = arith.constant 0 : index
    %14 = vector.load %arg2[%13, %c0_4, %c0_5] : memref<64x1x128xf32, #tpu.memory_space<vmem>>, vector<1x1x128xf32>
    %15 = vector.shape_cast %14 : vector<1x1x128xf32> to vector<1x128xf32>
    %c1 = arith.constant 1 : index
    %c0_6 = arith.constant 0 : index
    %c0_7 = arith.constant 0 : index
    %16 = vector.load %arg3[%c1, %c0_6, %c0_7] : memref<8x1x128xf32, #tpu.memory_space<vmem>>, vector<1x1x128xf32>
    %17 = vector.shape_cast %16 : vector<1x1x128xf32> to vector<1x128xf32>
    %18 = vector.shape_cast %15 : vector<1x128xf32> to vector<1x1x128xf32>
    tpu.vector_store %arg3[%c1, %c0_6, %c0_7], %18 {strides = array<i32>} : memref<8x1x128xf32, #tpu.memory_space<vmem>>, vector<1x1x128xf32>,
    %c2_i32 = arith.constant 2 : i32
    %19 = arith.addi %0, %c2_i32 : i32
    %20 = arith.index_cast %19 : i32 to index
    %21 = memref.load %arg1[%20] : memref<16xi32, #tpu.memory_space<smem>>
    %22 = arith.index_cast %21 : i32 to index
    %c0_8 = arith.constant 0 : index
    %c0_9 = arith.constant 0 : index
    %23 = vector.load %arg2[%22, %c0_8, %c0_9] : memref<64x1x128xf32, #tpu.memory_space<vmem>>, vector<1x1x128xf32>
    %24 = vector.shape_cast %23 : vector<1x1x128xf32> to vector<1x128xf32>
    %c2 = arith.constant 2 : index
    %c0_10 = arith.constant 0 : index
    %c0_11 = arith.constant 0 : index
    %25 = vector.load %arg3[%c2, %c0_10, %c0_11] : memref<8x1x128xf32, #tpu.memory_space<vmem>>, vector<1x1x128xf32>
    %26 = vector.shape_cast %25 : vector<1x1x128xf32> to vector<1x128xf32>
    %27 = vector.shape_cast %24 : vector<1x128xf32> to vector<1x1x128xf32>
    tpu.vector_store %arg3[%c2, %c0_10, %c0_11], %27 {strides = array<i32>} : memref<8x1x128xf32, #tpu.memory_space<vmem>>, vector<1x1x128xf32>,
    %c3_i32 = arith.constant 3 : i32
    %28 = arith.addi %0, %c3_i32 : i32
    %29 = arith.index_cast %28 : i32 to index
    %30 = memref.load %arg1[%29] : memref<16xi32, #tpu.memory_space<smem>>
    %31 = arith.index_cast %30 : i32 to index
    %c0_12 = arith.constant 0 : index
    %c0_13 = arith.constant 0 : index
    %32 = vector.load %arg2[%31, %c0_12, %c0_13] : memref<64x1x128xf32, #tpu.memory_space<vmem>>, vector<1x1x128xf32>
    %33 = vector.shape_cast %32 : vector<1x1x128xf32> to vector<1x128xf32>
    %c3 = arith.constant 3 : index
    %c0_14 = arith.constant 0 : index
    %c0_15 = arith.constant 0 : index
    %34 = vector.load %arg3[%c3, %c0_14, %c0_15] : memref<8x1x128xf32, #tpu.memory_space<vmem>>, vector<1x1x128xf32>
    %35 = vector.shape_cast %34 : vector<1x1x128xf32> to vector<1x128xf32>
    %36 = vector.shape_cast %33 : vector<1x128xf32> to vector<1x1x128xf32>
    tpu.vector_store %arg3[%c3, %c0_14, %c0_15], %36 {strides = array<i32>} : memref<8x1x128xf32, #tpu.memory_space<vmem>>, vector<1x1x128xf32>,
    %c4_i32 = arith.constant 4 : i32
    %37 = arith.addi %0, %c4_i32 : i32
    %38 = arith.index_cast %37 : i32 to index
    %39 = memref.load %arg1[%38] : memref<16xi32, #tpu.memory_space<smem>>
    %40 = arith.index_cast %39 : i32 to index
    %c0_16 = arith.constant 0 : index
    %c0_17 = arith.constant 0 : index
    %41 = vector.load %arg2[%40, %c0_16, %c0_17] : memref<64x1x128xf32, #tpu.memory_space<vmem>>, vector<1x1x128xf32>
    %42 = vector.shape_cast %41 : vector<1x1x128xf32> to vector<1x128xf32>
    %c4 = arith.constant 4 : index
    %c0_18 = arith.constant 0 : index
    %c0_19 = arith.constant 0 : index
    %43 = vector.load %arg3[%c4, %c0_18, %c0_19] : memref<8x1x128xf32, #tpu.memory_space<vmem>>, vector<1x1x128xf32>
    %44 = vector.shape_cast %43 : vector<1x1x128xf32> to vector<1x128xf32>
    %45 = vector.shape_cast %42 : vector<1x128xf32> to vector<1x1x128xf32>
    tpu.vector_store %arg3[%c4, %c0_18, %c0_19], %45 {strides = array<i32>} : memref<8x1x128xf32, #tpu.memory_space<vmem>>, vector<1x1x128xf32>,
    %c5_i32 = arith.constant 5 : i32
    %46 = arith.addi %0, %c5_i32 : i32
    %47 = arith.index_cast %46 : i32 to index
    %48 = memref.load %arg1[%47] : memref<16xi32, #tpu.memory_space<smem>>
    %49 = arith.index_cast %48 : i32 to index
    %c0_20 = arith.constant 0 : index
    %c0_21 = arith.constant 0 : index
    %50 = vector.load %arg2[%49, %c0_20, %c0_21] : memref<64x1x128xf32, #tpu.memory_space<vmem>>, vector<1x1x128xf32>
    %51 = vector.shape_cast %50 : vector<1x1x128xf32> to vector<1x128xf32>
    %c5 = arith.constant 5 : index
    %c0_22 = arith.constant 0 : index
    %c0_23 = arith.constant 0 : index
    %52 = vector.load %arg3[%c5, %c0_22, %c0_23] : memref<8x1x128xf32, #tpu.memory_space<vmem>>, vector<1x1x128xf32>
    %53 = vector.shape_cast %52 : vector<1x1x128xf32> to vector<1x128xf32>
    %54 = vector.shape_cast %51 : vector<1x128xf32> to vector<1x1x128xf32>
    tpu.vector_store %arg3[%c5, %c0_22, %c0_23], %54 {strides = array<i32>} : memref<8x1x128xf32, #tpu.memory_space<vmem>>, vector<1x1x128xf32>,
    %c6_i32 = arith.constant 6 : i32
    %55 = arith.addi %0, %c6_i32 : i32
    %56 = arith.index_cast %55 : i32 to index
    %57 = memref.load %arg1[%56] : memref<16xi32, #tpu.memory_space<smem>>
    %58 = arith.index_cast %57 : i32 to index
    %c0_24 = arith.constant 0 : index
    %c0_25 = arith.constant 0 : index
    %59 = vector.load %arg2[%58, %c0_24, %c0_25] : memref<64x1x128xf32, #tpu.memory_space<vmem>>, vector<1x1x128xf32>
    %60 = vector.shape_cast %59 : vector<1x1x128xf32> to vector<1x128xf32>
    %c6 = arith.constant 6 : index
    %c0_26 = arith.constant 0 : index
    %c0_27 = arith.constant 0 : index
    %61 = vector.load %arg3[%c6, %c0_26, %c0_27] : memref<8x1x128xf32, #tpu.memory_space<vmem>>, vector<1x1x128xf32>
    %62 = vector.shape_cast %61 : vector<1x1x128xf32> to vector<1x128xf32>
    %63 = vector.shape_cast %60 : vector<1x128xf32> to vector<1x1x128xf32>
    tpu.vector_store %arg3[%c6, %c0_26, %c0_27], %63 {strides = array<i32>} : memref<8x1x128xf32, #tpu.memory_space<vmem>>, vector<1x1x128xf32>,
    %c7_i32 = arith.constant 7 : i32
    %64 = arith.addi %0, %c7_i32 : i32
    %65 = arith.index_cast %64 : i32 to index
    %66 = memref.load %arg1[%65] : memref<16xi32, #tpu.memory_space<smem>>
    %67 = arith.index_cast %66 : i32 to index
    %c0_28 = arith.constant 0 : index
    %c0_29 = arith.constant 0 : index
    %68 = vector.load %arg2[%67, %c0_28, %c0_29] : memref<64x1x128xf32, #tpu.memory_space<vmem>>, vector<1x1x128xf32>
    %69 = vector.shape_cast %68 : vector<1x1x128xf32> to vector<1x128xf32>
    %c7 = arith.constant 7 : index
    %c0_30 = arith.constant 0 : index
    %c0_31 = arith.constant 0 : index
    %70 = vector.load %arg3[%c7, %c0_30, %c0_31] : memref<8x1x128xf32, #tpu.memory_space<vmem>>, vector<1x1x128xf32>
    %71 = vector.shape_cast %70 : vector<1x1x128xf32> to vector<1x128xf32>
    %72 = vector.shape_cast %69 : vector<1x128xf32> to vector<1x1x128xf32>
    tpu.vector_store %arg3[%c7, %c0_30, %c0_31], %72 {strides = array<i32>} : memref<8x1x128xf32, #tpu.memory_space<vmem>>, vector<1x1x128xf32>,
    return
  }
  func.func @transform_0(%arg0: i32, %arg1: memref<16xi32, #tpu.memory_space<smem>>) -> (i32, i32, i32) {
    %c0_i32 = arith.constant 0 : i32
    %c0_i32_0 = arith.constant 0 : i32
    %c0_i32_1 = arith.constant 0 : i32
    %c0_i32_2 = arith.constant 0 : i32
    return %c0_i32, %c0_i32_0, %c0_i32_1 : i32, i32, i32
  }
  func.func @transform_1(%arg0: i32, %arg1: memref<16xi32, #tpu.memory_space<smem>>) -> (i32, i32, i32) {
    %c0_i32 = arith.constant 0 : i32
    %c0_i32_0 = arith.constant 0 : i32
    %c0_i32_1 = arith.constant 0 : i32
    return %arg0, %c0_i32, %c0_i32_0 : i32, i32, i32
  }
}

</mosaic_0001>

<bundles_post_ra>
// kernel: tpu_custom_call.1
= control target key start
LH: loop header
LB: loop body
LE: loop exit
PB: predicated region body
PF: predicated region fallthrough
CT: control target
= control target key end

     0   :  { %s613_s0 = inlined_call_operand.hbm [shape: s32[16], index: 0, kind: input, shape index: {}]   ;;  %s614_s1 = inlined_call_operand.hbm [shape: f32[64,1,128], index: 1, kind: input, shape index: {}]   ;;  %s615_s2 = inlined_call_operand.hbm [shape: f32[16,1,128], index: 2, kind: output, shape index: {}]  }
   0x1   :  { %s322_s11 = scalar_lea.hbm %s613_s0, 16 }
   0x2   :  { %p323_p0 = scmp.ne.s32.totalorder %s613_s0, %s322_s11  ;;  %p326_p1 = scmp.lt.u32.totalorder %s322_s11, %s613_s0 }
   0x4   :  { %p328_p2 = pnand %p326_p1, %p323_p0 }
   0x6   :  { %331 = shalt.err (!%p328_p2)  }
   0x7   :  { %s430_s16 = smov [#allocation3]  }
   0x8   :  { %8 = dma.hbm_to_smem %s613_s0, 16, %s430_s16, [#allocation2] }
   0x9   :  { %404 = dma.done.wait [#allocation2], 16 }
   0xa   :  { %405 = vsyncadd [#allocation2], 4294967280 }
   0xb   :  { %10 = sfence }
   0xc   :  { %11 = vsyncpa [#allocation5], 0 }
   0xd   :  { %12 = vsyncpa [#allocation6], 0 }
   0xe   :  { %14 = vsyncpa [#allocation6 + $0x1], 0  ;;  %s464_s19 = smov 0   ;;  %s466_s20 = smov 0  }
   0xf   :  { %s468_s21 = smov 0   ;;  %s470_s22 = smov 0  }
  0x10 LB: > { %s485_s0 = sadd.s32 4294967295, %s428_s22   ;;  %s247_s23 = sadd.s32 4294967294, %s428_s22   ;;  %s428_s22 = sphi %s470_s22, %s631_s22   ;;  %s424_s21 = sphi %s468_s21, %s630_s21   ;;  %s420_s20 = sphi %s466_s20, %s629_s20   ;;  %s416_s19 = sphi %s464_s19, %s628_s19  }
  0x11   : > { %s489_s24 = sadd.s32 1, %s428_s22   ;;  %s48_s25 = sadd.s32 1, %s424_s21 }
  0x12   : > { %s45_s26 = ssub.s32 %s428_s22, %s489_s24  ;;  %p58_p3 = scmp.ne.s32.totalorder %s424_s21, %s420_s20 }
  0x13   : > { %p46_p4 = scmp.eq.s32.totalorder %s45_s26, 0  ;;  %p59_p5 = scmp.eq.s32.totalorder %s485_s0, 1 }
  0x14   : > { %p64_p6 = scmp.ne.s32.totalorder %s420_s20, %s416_s19  ;;  %p65_p7 = scmp.eq.s32.totalorder %s247_s23, 1 }
  0x15   : > { %s500_s27 = scalar_select %p46_p4, %s424_s21, %s48_s25  }
  0x16   : > { %p502_p8 = por %p59_p5, %p58_p3  ;;  %p506_p9 = por %p65_p7, %p64_p6 }
  0x17   : > { %p248_p10 = scmp.ge.s32.totalorder %s428_s22, 1  ;;  %p72_p11 = scmp.lt.s32.totalorder %s428_s22, 3 }
  0x18   : > { %s619_s28 = scalar_select %p502_p8, 1, 0 }
  0x19   : > { %s620_s29 = scalar_select %p506_p9, 1, 0 }
  0x1a   : > { %p616_p12 = scmp.eq.s32.totalorder %s485_s0, 0  ;;  %p513_p13 = pnand %p248_p10, %p72_p11 }
  0x1b   : > { %s431_s3 = smov [#allocation4]   ;;  %s332_s8 = scalar_lea.hbm %s614_s1, 1024 }
  0x1c   : > { %s621_s30 = scalar_select %p513_p13, 1, 0 }
  0x1d   : > { %s84_s4 = sshll.u32 %s431_s3, 4  ;;  %p273_p0 = pneg %p513_p13  ;;  %s85_s4 = int_to_ptr.vmem [resolvable:$true] %s84_s4 }
  0x1e   : > { %p333_p2 = scmp.ne.s32.totalorder %s614_s1, %s332_s8  ;;  %p339_p6 = scmp.lt.u32.totalorder %s332_s8, %s614_s1 }
  0x1f   : > { %p521_p1 = pnand %p616_p12, %p273_p0 }
  0x21   : > { %p334_p3 = pneg %p521_p1 }
  0x23   : > { %p335_p4 = pnand %p334_p3, %p333_p2 }
  0x25   : > { %p336_p5 = pneg %p335_p4 }
  0x27   : > { %p341_p7 = pnand %p339_p6, %p336_p5 }
  0x29   : > { %344 = shalt.err (!%p341_p7)
}
  0x2a   : > { %s345_s13 = scalar_lea.vmem %s85_s4, 1024  ;;  %p353_p12 = scmp.lt.s32.totalorder %s85_s4, %s85_s4 }
  0x2b   : > { %p346_p10 = scmp.ne.s32.totalorder %s85_s4, %s345_s13  ;;  %p354_p9 = scmp.lt.s32.totalorder %s345_s13, %s345_s13 }
  0x2d   : > { %p348_p11 = pnand %p346_p10, %p334_p3  ;;  %p355_p8 = por %p354_p9, %p353_p12 }
  0x2f   : > { %p349_p0 = pneg %p348_p11 }
  0x31   : > { %p356_p13 = pnand %p355_p8, %p349_p0 }
  0x33   : > { %359 = shalt.err (!%p356_p13)
}
  0x34   : > { %s432_s14 = smov 16   ;;  %s433_s15 = smov 1  }
  0x35   : > { %276 = dma.hbm_to_vmem [thread:$0]  (!%p521_p1), %s614_s1, 1024, %s85_s4, [#allocation5], %s432_s14, %s432_s14, %s433_s15  }
  0x36   : > { %p623_p2 = scmp.ne.s32.totalorder %s621_s30, 0 }
  0x37   : > { %p624_p4 = scmp.eq.s32.totalorder (!%p623_p2), %s485_s0, 0 }
  0x38   : > { %100 = sbr.rel (%p623_p2) target bundleno = 104 (0x68), region = 24 }
  0x3f   : > { %407 = dma.done.wait (%p624_p4), [#allocation5], 1024   ;;  %p625_p3 = pmov %p624_p4 }
  0x40   : > { %s112_s18 = sand.u32 1, %s420_s20   ;;  %s253_s23 = sshll.u32 %s485_s0, 3 }
  0x41   : > { %409 = vsyncadd (%p625_p3), [#allocation5], 4294966272  ;;  %s252_s25 = sshll.u32 %s112_s18, 3  ;;  %s117_s26 = sld [smem:[#allocation3 + %s253_s23]] }
  0x42   : > { %s121_s3 = sadd.s32 1, %s253_s23  ;;  %s127_s4 = sadd.s32 2, %s253_s23 }
  0x43   : > { %s122_s5 = sld [smem:[#allocation3 + %s121_s3]]  ;;  %s133_s6 = sadd.s32 3, %s253_s23 }
  0x44   : > { %s128_s30 = sld [smem:[#allocation3 + %s127_s4]]  ;;  %s139_s8 = sadd.s32 4, %s253_s23 }
  0x45   : > { %s134_s7 = sld [smem:[#allocation3 + %s133_s6]]  ;;  %s145_s11 = sadd.s32 5, %s253_s23 }
  0x46   : > { %s140_s10 = sld [smem:[#allocation3 + %s139_s8]]  ;;  %s551_s12 = scalar_lea.vmem [#allocation7], %s252_s25 }
  0x47   : > { %s118_s9 = scalar_lea.vmem [#allocation4], %s117_s26  ;;  %s146_s13 = sld [smem:[#allocation3 + %s145_s11]] }
  0x48   : > { %v119_v0 = vld [vmem:[%s118_s9] sm:$0x1]  ;;  %s151_s14 = sadd.s32 6, %s253_s23  ;;  %s157_s17 = sadd.s32 7, %s253_s23 }
  0x49   : > { %120 = vst [vmem:[%s551_s12] sm:$0x1] %v119_v0  ;;  %s152_s15 = sld [smem:[#allocation3 + %s151_s14]]  ;;  %s123_s16 = scalar_lea.vmem [#allocation4], %s122_s5 }
  0x4a   : > { %v124_v1 = vld [vmem:[%s123_s16] sm:$0x1]  ;;  %s129_s26 = scalar_lea.vmem [#allocation4], %s128_s30  ;;  %s158_s3 = sld [smem:[#allocation3 + %s157_s17]] }
  0x4b   : > { %254 = vst [vmem:[%s551_s12 + $0x1] sm:$0x1] %v124_v1  ;;  %v130_v2 = vld [vmem:[%s129_s26] sm:$0x1]  ;;  %s135_s25 = scalar_lea.vmem [#allocation4], %s134_s7  ;;  %s177_s4 = sshll.u32 %s551_s12, 4  ;;  %s560_s4 = int_to_ptr.vmem [resolvable:$true] %s177_s4 }
  0x4c   : > { %v136_v3 = vld [vmem:[%s135_s25] sm:$0x1]  ;;  %255 = vst [vmem:[%s551_s12 + $0x2] sm:$0x1] %v130_v2  ;;  %s141_s6 = scalar_lea.vmem [#allocation4], %s140_s10  ;;  %s266_s8 = sshll.u32 %s485_s0, 7 }
  0x4d   : > { %256 = vst [vmem:[%s551_s12 + $0x3] sm:$0x1] %v136_v3  ;;  %v142_v4 = vld [vmem:[%s141_s6] sm:$0x1]  ;;  %s147_s5 = scalar_lea.vmem [#allocation4], %s146_s13  ;;  %s567_s9 = scalar_lea.hbm %s615_s2, %s266_s8 }
  0x4e   : > { %257 = vst [vmem:[%s551_s12 + $0x4] sm:$0x1] %v142_v4  ;;  %v148_v5 = vld [vmem:[%s147_s5] sm:$0x1]  ;;  %s572_s0 = scalar_lea.sflag [#allocation6], %s112_s18  ;;  %s360_s11 = scalar_lea.vmem %s560_s4, 128 }
  0x4f   : > { %258 = vst [vmem:[%s551_s12 + $0x5] sm:$0x1] %v148_v5  ;;  %s153_s23 = scalar_lea.vmem [#allocation4], %s152_s15  ;;  %p361_p8 = scmp.ne.s32.totalorder %s560_s4, %s360_s11 }
  0x50   : > { %v154_v6 = vld [vmem:[%s153_s23] sm:$0x1]  ;;  %s159_s10 = scalar_lea.vmem [#allocation4], %s158_s3  ;;  %p626_p9 = scmp.ne.s32.totalorder %s619_s28, 0 }
  0x51   : > { %259 = vst [vmem:[%s551_s12 + $0x6] sm:$0x1] %v154_v6  ;;  %v160_v7 = vld [vmem:[%s159_s10] sm:$0x1]  ;;  %s434_s13 = smov [#allocation7]  }
  0x52   : > { %260 = vst [vmem:[%s551_s12 + $0x7] sm:$0x1] %v160_v7  ;;  %p362_p12 = pnand %p361_p8, %p626_p9  ;;  %s364_s14 = sshll.u32 %s434_s13, 4  ;;  %s365_s14 = int_to_ptr.vmem [resolvable:$false] %s364_s14 }
  0x53   : > { %s366_s15 = scalar_lea.vmem %s365_s14, 256  ;;  %p367_p1 = scmp.lt.s32.totalorder %s560_s4, %s365_s14 }
  0x54   : > { %p363_p13 = pneg %p362_p12  ;;  %p368_p5 = scmp.lt.s32.totalorder %s366_s15, %s360_s11 }
  0x56   : > { %p369_p6 = por %p368_p5, %p367_p1 }
  0x58   : > { %p370_p7 = pnand %p369_p6, %p363_p13 }
  0x5a   : > { %373 = shalt.err (!%p370_p7)
}
  0x5b   : > { %s374_s18 = scalar_lea.hbm %s567_s9, 128  ;;  %s378_s17 = scalar_lea.hbm %s615_s2, 256 }
  0x5c   : > { %p375_p10 = scmp.ne.s32.totalorder %s567_s9, %s374_s18  ;;  %p379_p2 = scmp.lt.u32.totalorder %s567_s9, %s615_s2 }
  0x5d   : > { %p380_p4 = scmp.lt.u32.totalorder %s378_s17, %s374_s18  ;;  %p382_p8 = scmp.lt.u32.totalorder %s374_s18, %s567_s9 }
  0x5e   : > { %p376_p11 = pnand %p375_p10, %p626_p9 }
  0x5f   : > { %p381_p3 = por %p380_p4, %p379_p2 }
  0x60   : > { %p377_p0 = pneg %p376_p11 }
  0x61   : > { %p383_p12 = por %p382_p8, %p381_p3 }
  0x63   : > { %p384_p13 = pnand %p383_p12, %p377_p0 }
  0x65   : > { %387 = shalt.err (!%p384_p13)
}
  0x66   : > { %s435_s3 = smov 16   ;;  %s436_s6 = smov 1  }
  0x67   : > { %271 = dma.vmem_to_hbm [thread:$0]  (%p626_p9), %s560_s4, 128, %s567_s9, %s572_s0, %s435_s3, %s435_s3, %s436_s6  }
  0x68 PF: > { %p283_p1 = scmp.ge.s32.totalorder %s428_s22, 2  ;;  %s192_s8 = sand.u32 1, %s416_s19  }
  0x69   : > { %p627_p5 = scmp.ne.s32.totalorder %s620_s29, 0  ;;  %s193_s5 = scalar_lea.sflag [#allocation6], %s192_s8 }
  0x6b   : > { %p278_p6 = pnand %p283_p1, %p627_p5 }
  0x6d   : > { %411 = dma.done.wait (!%p278_p6), %s193_s5, 128  }
  0x6e   : > { %413 = vsyncadd (!%p278_p6), %s193_s5, 4294967168  ;;  %p17_p7 = scmp.ge.s32.totalorder %s489_s24, 4   ;;  %s628_s19 = smov %s420_s20 }
  0x6f   : > { %s629_s20 = smov %s424_s21  ;;  %s630_s21 = smov %s500_s27 }
  0x70   : > { %s631_s22 = smov %s489_s24  ;;  %19 = sbr.rel (!%p17_p7) target bundleno = 16 (0x10), region = 76 }
  0x77   :  { %198 = vsyncpa [#allocation5], 1 }
  0x78   :  { %200 = vsyncpa [#allocation5 + $0x1], 1 }
  0x79   :  { %201 = vsyncpa [#allocation6], 1 }
  0x7a   :  { %203 = vsyncpa [#allocation6 + $0x1], 1 }

</bundles_post_ra>
